<compile_context>
chip_gen: v5e
topology: v5e:2x2
jax: 0.10.0
libtpu: 0.0.40
codegen_flags: <defaults>
</compile_context>

<pallas_src>
import jax
import jax.numpy as jnp
from jax.experimental import pallas as pl
from jax.experimental.pallas import tpu as pltpu

# ---- config (mirrors args of the PyTorch module) ----------------------------
HIDDEN = 768                      # BERT hidden size
AVG_SIZE = 9                      # args.avg_size
POOLED = HIDDEN + 1 - AVG_SIZE    # 760
NUM_CLASSES = 10                  # args.num_classes
N_PAD = 128                       # lane-dense padded output width
DROPOUT_NUM = 1                   # args.dropout_num
# TODO(synk): dropout is a train-time op; in eval mode the multi-sample-dropout
# branch (dropout_num > 1) collapses to fc(output), so it is the identity here.


# ---- Pallas kernel: fused (avg_pool . fc + bias) as a single aligned matmul --
def cls_head_kernel(x_ref, w_ref, b_ref, o_ref):
    # x_ref: [TB, 768] f32 (cast to bf16 in-register), w_ref: [768, 128] bf16
    # (avg-pool folded, zero-padded cols), b_ref: [1, 128] f32 (zero-padded bias)
    x = x_ref[...].astype(jnp.bfloat16)
    acc = jnp.dot(x, w_ref[...], preferred_element_type=jnp.float32)  # [TB, 128]
    o_ref[...] = acc + b_ref[...]


def build_w_eff(fc_w):
    """Fold avg_pool1d(k=AVG_SIZE, stride=1) into the fc weight.

    fc_w: [NUM_CLASSES, POOLED] (nn.Linear layout). Returns [HIDDEN, N_PAD] bf16.
    """
    j = jnp.arange(HIDDEN)[:, None]          # hidden index
    p = jnp.arange(POOLED)[None, :]          # pooled-window index
    A = ((j >= p) & (j < p + AVG_SIZE)).astype(jnp.float32) * (1.0 / AVG_SIZE)
    w_eff = A @ fc_w.T                                        # [HIDDEN, NUM_CLASSES]
    w_pad = jnp.zeros((HIDDEN, N_PAD), jnp.float32).at[:, :NUM_CLASSES].set(w_eff)
    return w_pad.astype(jnp.bfloat16)


def build_b_eff(fc_b):
    """Zero-pad the bias to a lane-dense [1, N_PAD] f32 row."""
    return jnp.zeros((1, N_PAD), jnp.float32).at[0, :NUM_CLASSES].set(fc_b)


def cls_head(cls_feats, w_eff_padded, b_eff_padded, *, tb=1024):
    """cls_feats: [B, HIDDEN] f32; w_eff_padded: [HIDDEN, N_PAD] bf16;
    b_eff_padded: [1, N_PAD] f32.  Returns [B, NUM_CLASSES] f32 logits."""
    B = cls_feats.shape[0]
    cls_feats = cls_feats.astype(jnp.float32)

    # Tile the batch: aim for >=2 grid steps (v7x has 2 TCs), cap at tb,
    # keep the tile sublane-aligned.  Small batches use one full-extent tile.
    TB = min(tb, max(8, pl.cdiv(pl.cdiv(B, 2), 8) * 8))
    if TB >= B:
        TB = B
    grid = pl.cdiv(B, TB)   # boundary tile allowed; OOB rows are sliced off below

    out = pl.pallas_call(
        cls_head_kernel,
        out_shape=jax.ShapeDtypeStruct((B, N_PAD), jnp.float32),
        grid=(grid,),
        in_specs=[
            pl.BlockSpec((TB, HIDDEN), lambda i: (i, 0)),      # batch tile (streamed)
            pl.BlockSpec((HIDDEN, N_PAD), lambda i: (0, 0)),   # resident weight
            pl.BlockSpec((1, N_PAD), lambda i: (0, 0)),        # resident bias
        ],
        out_specs=pl.BlockSpec((TB, N_PAD), lambda i: (i, 0)),
        compiler_params=pltpu.CompilerParams(
            dimension_semantics=("parallel",)),
    )(cls_feats, w_eff_padded, b_eff_padded)

    # dropout (eval -> identity); drop padded lanes
    return out[:, :NUM_CLASSES]                                # [B, NUM_CLASSES]


# ---- plain-JAX glue ----------------------------------------------------------
def fake_bert_cls(input_id, emb_table, mix_w):
    # TODO(synk): the real NeZha/Bert encoder is an external pretrained module with
    # no in-script definition; substitute a deterministic embedding + mixing that
    # produces the per-sequence [CLS] feature (shape [HIDDEN]).
    tok = emb_table[input_id]                       # [seq_len, HIDDEN]
    return jnp.tanh(tok.mean(axis=0) @ mix_w)       # [HIDDEN]


def reference_head(cls_feats, fc_w, fc_b):
    """Pure-JAX f32 reference of steps 2-4 for a correctness check."""
    windows = jnp.stack(
        [cls_feats[:, k:k + POOLED] for k in range(AVG_SIZE)], axis=0
    )
    pooled = windows.mean(axis=0)                   # [B, POOLED]
    return pooled @ fc_w.T + fc_b                   # [B, NUM_CLASSES]


if __name__ == "__main__":
    key = jax.random.PRNGKey(0)
    k_emb, k_mix, k_w, k_b, k_ids = jax.random.split(key, 5)

    VOCAB = 64
    # deterministic synthetic parameters
    emb_table = 0.02 * jax.random.normal(k_emb, (VOCAB, HIDDEN), jnp.float32)
    mix_w = 0.02 * jax.random.normal(k_mix, (HIDDEN, HIDDEN), jnp.float32)
    fc_w = 0.02 * jax.random.normal(k_w, (NUM_CLASSES, POOLED), jnp.float32)  # nn.Linear [out, in]
    fc_b = 0.02 * jax.random.normal(k_b, (NUM_CLASSES,), jnp.float32)

    # dynamic-length token-id sequences (list, one per example), batch B = 4
    seq_lens = [5, 8, 11, 7]
    input_ids = [
        jax.random.randint(jax.random.fold_in(k_ids, i), (L,), 0, VOCAB)
        for i, L in enumerate(seq_lens)
    ]

    # step 1 (glue): stack per-sequence [CLS] features -> [B, HIDDEN]
    cls_feats = jnp.stack([fake_bert_cls(ids, emb_table, mix_w) for ids in input_ids])

    # host-side weight prep: fold avg-pool into fc weight, pad lanes
    w_eff = build_w_eff(fc_w)                       # [HIDDEN, N_PAD] bf16
    b_eff = build_b_eff(fc_b)                       # [1, N_PAD] f32

    # steps 2-4 fused in the Pallas kernel
    out = cls_head(cls_feats, w_eff, b_eff)
    out = jax.block_until_ready(out)

    ref = reference_head(cls_feats, fc_w, fc_b)
    assert out.shape == (len(seq_lens), NUM_CLASSES)
    # bf16 operands (f32 accumulation) -> loosened tolerance vs the f32 reference
    assert jnp.allclose(out, ref, atol=2e-2, rtol=2e-2), "mismatch vs pure-JAX reference"

    print("KERNEL_OK")
</pallas_src>

<mosaic_0001>
module attributes {stable_mosaic.version = 11 : i64} {
  func.func @cls_head_kernel(%arg0: i32, %arg1: memref<4x768xf32, #tpu.memory_space<vmem>>, %arg2: memref<768x128xbf16, #tpu.memory_space<vmem>>, %arg3: memref<1x128xf32, #tpu.memory_space<vmem>>, %arg4: memref<4x128xf32, #tpu.memory_space<vmem>>) attributes {dimension_semantics = [#tpu.dimension_semantics<parallel>], iteration_bounds = array<i64: 1>, scalar_prefetch = 0 : i64, scratch_operands = 0 : i64, tpu.core_type = #tpu.core_type<tc>, window_params = [{transform_indices = @transform_0, window_bounds = array<i64: 4, 768>}, {pipeline_mode = #tpu.pipeline_mode<synchronous>, transform_indices = @transform_1, window_bounds = array<i64: 768, 128>}, {pipeline_mode = #tpu.pipeline_mode<synchronous>, transform_indices = @transform_2, window_bounds = array<i64: 1, 128>}, {transform_indices = @transform_3, window_bounds = array<i64: 4, 128>}]} {
    %c0 = arith.constant 0 : index
    %c0_0 = arith.constant 0 : index
    %0 = vector.load %arg1[%c0, %c0_0] : memref<4x768xf32, #tpu.memory_space<vmem>>, vector<4x768xf32>
    %1 = arith.truncf %0 : vector<4x768xf32> to vector<4x768xbf16>
    %c0_1 = arith.constant 0 : index
    %c0_2 = arith.constant 0 : index
    %2 = vector.load %arg2[%c0_1, %c0_2] : memref<768x128xbf16, #tpu.memory_space<vmem>>, vector<768x128xbf16>
    %cst = arith.constant dense<0.000000e+00> : vector<4x128xf32>
    %3 = tpu.matmul %1, %2, %cst {dimension_numbers = #tpu.dot_dimension_numbers<[1], [0], [0], [1], [0, 0, 1, 1], [], []>} : vector<4x768xbf16>, vector<768x128xbf16>, vector<4x128xf32> -> vector<4x128xf32>
    %c0_3 = arith.constant 0 : index
    %c0_4 = arith.constant 0 : index
    %4 = vector.load %arg3[%c0_3, %c0_4] : memref<1x128xf32, #tpu.memory_space<vmem>>, vector<1x128xf32>
    %5 = vector.broadcast %4 : vector<1x128xf32> to vector<4x128xf32>
    %6 = arith.addf %3, %5 : vector<4x128xf32>
    %c0_5 = arith.constant 0 : index
    %c0_6 = arith.constant 0 : index
    %7 = vector.load %arg4[%c0_5, %c0_6] : memref<4x128xf32, #tpu.memory_space<vmem>>, vector<4x128xf32>
    tpu.vector_store %arg4[%c0_5, %c0_6], %6 {strides = array<i32>} : memref<4x128xf32, #tpu.memory_space<vmem>>, vector<4x128xf32>,
    return
  }
  func.func @transform_0(%arg0: i32) -> (i32, i32) {
    %c0_i32 = arith.constant 0 : i32
    %c0_i32_0 = arith.constant 0 : i32
    return %arg0, %c0_i32 : i32, i32
  }
  func.func @transform_1(%arg0: i32) -> (i32, i32) {
    %c0_i32 = arith.constant 0 : i32
    %c0_i32_0 = arith.constant 0 : i32
    %c0_i32_1 = arith.constant 0 : i32
    return %c0_i32, %c0_i32_0 : i32, i32
  }
  func.func @transform_2(%arg0: i32) -> (i32, i32) {
    %c0_i32 = arith.constant 0 : i32
    %c0_i32_0 = arith.constant 0 : i32
    %c0_i32_1 = arith.constant 0 : i32
    return %c0_i32, %c0_i32_0 : i32, i32
  }
  func.func @transform_3(%arg0: i32) -> (i32, i32) {
    %c0_i32 = arith.constant 0 : i32
    %c0_i32_0 = arith.constant 0 : i32
    return %arg0, %c0_i32 : i32, i32
  }
}

</mosaic_0001>

<bundles_post_ra>
// kernel: tpu_custom_call.1
= control target key start
LH: loop header
LB: loop body
LE: loop exit
PB: predicated region body
PF: predicated region fallthrough
CT: control target
= control target key end

     0   :  { %8 = vsyncpa [#allocation3], 0  ;;  %s920_s0 = inlined_call_operand.hbm [shape: f32[4,768], index: 0, kind: input, shape index: {}]   ;;  %s921_s1 = inlined_call_operand.hbm [shape: bf16[768,128], index: 1, kind: input, shape index: {}]   ;;  %s922_s2 = inlined_call_operand.vmem [shape: f32[1,128], index: 2, kind: input, shape index: {}]   ;;  %s923_s3 = inlined_call_operand.hbm [shape: f32[4,128], index: 3, kind: output, shape index: {}]  }
   0x1   :  { %9 = vsyncpa [#allocation6], 0 }
   0x2   :  { %10 = vsyncpa [#allocation4], 0  ;;  %s16_s14 = sshll.u32 %s920_s0, 4  ;;  %s883_s15 = smov [#allocation2]   ;;  %s17_s14 = int_to_ptr.hbm [resolvable:$true] %s16_s14 }
   0x3   :  { %s18_s16 = sshll.u32 %s883_s15, 4  ;;  %s26_s19 = sshll.u32 %s921_s1, 4  ;;  %s19_s16 = int_to_ptr.vmem [resolvable:$true] %s18_s16  ;;  %s27_s19 = int_to_ptr.hbm [resolvable:$true] %s26_s19 }
   0x4   :  { %21 = dma.hbm_to_vmem [thread:$0]  %s17_s14, 384, %s19_s16, [#allocation3]  }
   0x5   :  { %s884_s20 = smov [#allocation5]   ;;  %s885_s22 = smov 64  }
   0x6   :  { %s28_s21 = sshll.u32 %s884_s20, 4  ;;  %s886_s23 = smov 4   ;;  %s29_s21 = int_to_ptr.vmem [resolvable:$true] %s28_s21 }
   0x7   :  { %34 = dma.hbm_to_vmem [thread:$0]  %s27_s19, 6144, %s29_s21, [#allocation6], %s885_s22, %s885_s22, %s886_s23  }
   0x8   :  { %877 = dma.done.wait [#allocation3], 384  }
   0x9   :  { %878 = vsyncadd [#allocation3], 4294966912 }
   0xa   :  { %879 = dma.done.wait [#allocation6], 6144  }
   0xb   :  { %880 = vsyncadd [#allocation6], 4294961152  ;;  %v758_v0 = vld [vmem:[#allocation5 + $0x38] sm:$0xff]  ;;  %v757_v2 = vld [vmem:[#allocation5 + $0x30] sm:$0xff]  ;;  %s887_s24 = smov [#allocation7]   ;;  %s548_s28 = sshll.u32 %s923_s3, 4  ;;  %s549_s28 = int_to_ptr.hbm [resolvable:$true] %s548_s28 }
   0xc   :  { %v766_v1 = vld [vmem:[#allocation5 + $0x78] sm:$0xff]  ;;  %462 = vmatpush.bf16.msra.mxu0 %v758_v0  ;;  %v765_v3 = vld [vmem:[#allocation5 + $0x70] sm:$0xff]  ;;  %v756_v8 = vld [vmem:[#allocation5 + $0x28] sm:$0xff]  ;;  %s546_s25 = sshll.u32 %s887_s24, 4  ;;  %s547_s25 = int_to_ptr.vmem [resolvable:$true] %s546_s25 }
   0xd   :  { %475 = vmatpush.bf16.msra.mxu1 %v766_v1  ;;  %v774_v4 = vld [vmem:[#allocation5 + $0xb8] sm:$0xff]  ;;  %v773_v6 = vld [vmem:[#allocation5 + $0xb0] sm:$0xff]  ;;  %v764_v9 = vld [vmem:[#allocation5 + $0x68] sm:$0xff] }
   0xe   :  { %v782_v5 = vld [vmem:[#allocation5 + $0xf8] sm:$0xff]  ;;  %488 = vmatpush.bf16.msra.mxu2 %v774_v4  ;;  %v781_v7 = vld [vmem:[#allocation5 + $0xf0] sm:$0xff]  ;;  %v772_v10 = vld [vmem:[#allocation5 + $0xa8] sm:$0xff] }
   0xf   :  { %501 = vmatpush.bf16.msra.mxu3 %v782_v5  ;;  %v780_v11 = vld [vmem:[#allocation5 + $0xe8] sm:$0xff]  ;;  %v755_v12 = vld [vmem:[#allocation5 + $0x20] sm:$0xff]  ;;  %v46_v17 = vld [vmem:[#allocation2 + $0x8] sm:$0xff] }
  0x10   :  { %463 = vmatpush.bf16.msra.mxu0 %v757_v2  ;;  %v763_v13 = vld [vmem:[#allocation5 + $0x60] sm:$0xff]  ;;  %v45_v14 = vld [vmem:[#allocation2] sm:$0xff]  ;;  %v754_v18 = vld [vmem:[#allocation5 + $0x18] sm:$0xff]  ;;  %53 = vst [vmem:[#allocation1 + $0x10] ss:$2 sm:$0xff] %v46_v17 }
  0x11   :  { %476 = vmatpush.bf16.msra.mxu1 %v765_v3  ;;  %v771_v15 = vld [vmem:[#allocation5 + $0xa0] sm:$0xff]  ;;  %51 = vst [vmem:[#allocation1] ss:$2 sm:$0xff] %v45_v14  ;;  %v762_v19 = vld [vmem:[#allocation5 + $0x58] sm:$0xff]  ;;  %v753_v22 = vld [vmem:[#allocation5 + $0x10] sm:$0xff] }
  0x12   :  { %489 = vmatpush.bf16.msra.mxu2 %v773_v6  ;;  %v779_v16 = vld [vmem:[#allocation5 + $0xe0] sm:$0xff]  ;;  %v770_v20 = vld [vmem:[#allocation5 + $0x98] sm:$0xff]  ;;  %v761_v23 = vld [vmem:[#allocation5 + $0x50] sm:$0xff] }
  0x13   :  { %502 = vmatpush.bf16.msra.mxu3 %v781_v7  ;;  %v778_v21 = vld [vmem:[#allocation5 + $0xd8] sm:$0xff]  ;;  %v769_v24 = vld [vmem:[#allocation5 + $0x90] sm:$0xff]  ;;  %v752_v27 = vld [vmem:[#allocation5 + $0x8] sm:$0xff] }
  0x14   :  { %464 = vmatpush.bf16.msra.mxu0 %v756_v8  ;;  %v777_v25 = vld [vmem:[#allocation5 + $0xd0] sm:$0xff]  ;;  %v47_v26 = vld [vmem:[#allocation2 + $0x10] sm:$0xff]  ;;  %v760_v28 = vld [vmem:[#allocation5 + $0x48] sm:$0xff] }
  0x15   :  { %477 = vmatpush.bf16.msra.mxu1 %v764_v9  ;;  %55 = vst [vmem:[#allocation1 + $0x20] ss:$2 sm:$0xff] %v47_v26  ;;  %v768_v29 = vld [vmem:[#allocation5 + $0x88] sm:$0xff]  ;;  %v751_v31 = vld [vmem:[#allocation5] sm:$0xff]  ;;  %v790_v35 = vld [vmem:[#allocation5 + $0x138] sm:$0xff] }
  0x16   :  { %490 = vmatpush.bf16.msra.mxu2 %v772_v10  ;;  %v776_v30 = vld [vmem:[#allocation5 + $0xc8] sm:$0xff]  ;;  %v759_v32 = vld [vmem:[#allocation5 + $0x40] sm:$0xff]  ;;  %v798_v36 = vld [vmem:[#allocation5 + $0x178] sm:$0xff] }
  0x17   :  { %503 = vmatpush.bf16.msra.mxu3 %v780_v11  ;;  %v767_v37 = vld [vmem:[#allocation5 + $0x80] sm:$0xff]  ;;  %v58_v41 = vld.sshfl [vmem:[#allocation1 + $0x10] sm:$0xff pattern:$0x75316420]  ;;  %v788_v47 = vld [vmem:[#allocation5 + $0x128] sm:$0xff] }
  0x18   :  { %465 = vmatpush.bf16.msra.mxu0 %v755_v12  ;;  %v56_v33 = vld.sshfl [vmem:[#allocation1] sm:$0xff pattern:$0x75316420]  ;;  %v57_v34 = vld.sshfl [vmem:[#allocation1 + $0x8] sm:$0xff pattern:$0x75316420]  ;;  %v70_v45 = vpack.c.bf16 %v58_v41, %v58_v41 }
  0x19   :  { %478 = vmatpush.bf16.msra.mxu1 %v763_v13  ;;  %v775_v38 = vld [vmem:[#allocation5 + $0xc0] sm:$0xff]  ;;  %v68_v39 = vpack.c.bf16 %v56_v33, %v56_v33  ;;  %v69_v40 = vpack.c.bf16 %v57_v34, %v57_v34  ;;  %v59_v42 = vld.sshfl [vmem:[#allocation1 + $0x18] sm:$0xff pattern:$0x75316420]  ;;  %v789_v43 = vld [vmem:[#allocation5 + $0x130] sm:$0xff] }
  0x1a   :  { %491 = vmatpush.bf16.msra.mxu2 %v771_v15  ;;  %v797_v44 = vld [vmem:[#allocation5 + $0x170] sm:$0xff]  ;;  %v71_v46 = vpack.c.bf16 %v59_v42, %v59_v42  ;;  %v796_v48 = vld [vmem:[#allocation5 + $0x168] sm:$0xff]  ;;  %v787_v49 = vld [vmem:[#allocation5 + $0x120] sm:$0xff] }
  0x1b   :  { %504 = vmatpush.bf16.msra.mxu3 %v779_v16  ;;  %v795_v50 = vld [vmem:[#allocation5 + $0x160] sm:$0xff]  ;;  %v786_v51 = vld [vmem:[#allocation5 + $0x118] sm:$0xff]  ;;  %v785_v53 = vld [vmem:[#allocation5 + $0x110] sm:$0xff] }
  0x1c   :  { %466 = vmatpush.bf16.msra.mxu0 %v754_v18  ;;  %v794_v52 = vld [vmem:[#allocation5 + $0x158] sm:$0xff]  ;;  %v793_v54 = vld [vmem:[#allocation5 + $0x150] sm:$0xff]  ;;  %v784_v55 = vld [vmem:[#allocation5 + $0x108] sm:$0xff] }
  0x1d   :  { %479 = vmatpush.bf16.msra.mxu1 %v762_v19  ;;  %v792_v56 = vld [vmem:[#allocation5 + $0x148] sm:$0xff]  ;;  %v783_v57 = vld [vmem:[#allocation5 + $0x100] sm:$0xff] }
  0x1e   :  { %492 = vmatpush.bf16.msra.mxu2 %v770_v20  ;;  %v791_v58 = vld [vmem:[#allocation5 + $0x140] sm:$0xff]  ;;  %v61_v60 = vld.sshfl [vmem:[#allocation1 + $0x28] sm:$0xff pattern:$0x75316420] }
  0x1f   :  { %505 = vmatpush.bf16.msra.mxu3 %v778_v21  ;;  %v60_v59 = vld.sshfl [vmem:[#allocation1 + $0x20] sm:$0xff pattern:$0x75316420]  ;;  %v73_v62 = vpack.c.bf16 %v61_v60, %v61_v60 }
  0x20   :  { %467 = vmatpush.bf16.msra.mxu0 %v753_v22  ;;  %v72_v61 = vpack.c.bf16 %v60_v59, %v60_v59  ;;  %v804_v5 = vld [vmem:[%s922_s2] ss:$0 sm:$0xff] }
  0x21   :  { %480 = vmatpush.bf16.msra.mxu1 %v761_v23 }
  0x22   :  { %493 = vmatpush.bf16.msra.mxu2 %v769_v24 }
  0x23   :  { %506 = vmatpush.bf16.msra.mxu3 %v777_v25 }
  0x24   :  { %468 = vmatpush.bf16.msra.mxu0 %v752_v27 }
  0x25   :  { %481 = vmatpush.bf16.msra.mxu1 %v760_v28 }
  0x26   :  { %494 = vmatpush.bf16.msra.mxu2 %v768_v29 }
  0x27   :  { %507 = vmatpush.bf16.msra.mxu3 %v776_v30 }
  0x28   :  { %469 = vmatpush.bf16.msra.mxu0 %v751_v31 }
  0x29   :  { %482 = vmatpush.bf16.msra.mxu1 %v759_v32 }
  0x2a   :  { %495 = vmatpush.bf16.msra.mxu2 %v767_v37 }
  0x2b   :  { %508 = vmatpush.bf16.msra.mxu3 %v775_v38  ;;  %470 = vmatmul.bf16.vlgmr.msra.gmra.mxu0 %v68_v39 }
  0x2c   :  { %514 = vmatpush.bf16.msrb.mxu0 %v790_v35  ;;  %483 = vmatmul.bf16.vlgmr.msra.gmra.mxu1 %v69_v40 }
  0x2d   :  { %527 = vmatpush.bf16.msrb.mxu1 %v798_v36  ;;  %496 = vmatmul.bf16.vlgmr.msra.gmra.mxu2 %v70_v45 }
  0x2e   :  { %509 = vmatmul.bf16.vlgmr.msra.gmra.mxu3 %v71_v46 }
  0x30   :  { %515 = vmatpush.bf16.msrb.mxu0 %v789_v43 }
  0x31   :  { %528 = vmatpush.bf16.msrb.mxu1 %v797_v44 }
  0x34   :  { %516 = vmatpush.bf16.msrb.mxu0 %v788_v47 }
  0x35   :  { %529 = vmatpush.bf16.msrb.mxu1 %v796_v48 }
  0x38   :  { %517 = vmatpush.bf16.msrb.mxu0 %v787_v49 }
  0x39   :  { %530 = vmatpush.bf16.msrb.mxu1 %v795_v50 }
  0x3c   :  { %518 = vmatpush.bf16.msrb.mxu0 %v786_v51 }
  0x3d   :  { %531 = vmatpush.bf16.msrb.mxu1 %v794_v52 }
  0x40   :  { %519 = vmatpush.bf16.msrb.mxu0 %v785_v53 }
  0x41   :  { %532 = vmatpush.bf16.msrb.mxu1 %v793_v54 }
  0x44   :  { %520 = vmatpush.bf16.msrb.mxu0 %v784_v55 }
  0x45   :  { %533 = vmatpush.bf16.msrb.mxu1 %v792_v56 }
  0x48   :  { %521 = vmatpush.bf16.msrb.mxu0 %v783_v57 }
  0x49   :  { %534 = vmatpush.bf16.msrb.mxu1 %v791_v58 }
  0x4b   :  { %522 = vmatmul.bf16.vlgmr.msrb.gmra.mxu0 %v72_v61 }
  0x4c   :  { %535 = vmatmul.bf16.vlgmr.msrb.gmra.mxu1 %v73_v62 }
  0xa8   :  { %v471_v63 = vpop.f32.mrf.mxu0 }
  0xa9   :  { %v484_v0 = vpop.f32.mrf.mxu1  ;;  %v472_v6 = vadd.f32 %v804_v5, %v471_v63 }
  0xab   :  { %v485_v9 = vadd.f32 %v484_v0, %v472_v6 }
  0xb0   :  { %v473_v1 = vpop.f32.mrf.mxu0  ;;  %v497_v3 = vpop.f32.mrf.mxu2 }
  0xb1   :  { %v486_v2 = vpop.f32.mrf.mxu1  ;;  %v510_v4 = vpop.f32.mrf.mxu3  ;;  %v498_v10 = vadd.f32 %v497_v3, %v485_v9 }
  0xb3   :  { %v511_v11 = vadd.f32 %v510_v4, %v498_v10 }
  0xb8   :  { %v499_v7 = vpop.f32.mrf.mxu2 }
  0xb9   :  { %v512_v8 = vpop.f32.mrf.mxu3 }
  0xc8   :  { %v523_v12 = vpop.f32.mrf.mxu0 }
  0xc9   :  { %v536_v13 = vpop.f32.mrf.mxu1  ;;  %v524_v14 = vadd.f32 %v523_v12, %v511_v11 }
  0xcb   :  { %v537_v15 = vadd.f32 %v536_v13, %v524_v14 }
  0xcd   :  { %540 = vst [vmem:[#allocation7] sm:$0xf] %v537_v15 }
  0xce   :  { %551 = dma.vmem_to_hbm [thread:$0]  %s547_s25, 64, %s549_s28, [#allocation4]  }
  0xd0   :  { %v525_v16 = vpop.f32.mrf.mxu0 }
  0xd1   :  { %v538_v17 = vpop.f32.mrf.mxu1 }
  0xd2   :  { %881 = dma.done.wait [#allocation4], 64  }
  0xd3   :  { %882 = vsyncadd [#allocation4], 4294967232 }
  0xd4   :  { %556 = vsyncpa [#allocation3], 1 }
  0xd5   :  { %557 = vsyncpa [#allocation6], 1 }
  0xd6   :  { %558 = vsyncpa [#allocation4], 1 }

</bundles_post_ra>
